<compile_context>
chip_gen: v7x
topology: tpu7x:2x2x1
jax: 0.10.0
libtpu: 0.0.40
codegen_flags: <defaults>
</compile_context>

<pallas_src>
import functools

import jax
import jax.numpy as jnp
from jax.experimental import pallas as pl
from jax.experimental.pallas import tpu as pltpu

LANE = 128
SUBLANE = 8
EPS = 1e-5


def _pad_to(n, m):
    return ((n + m - 1) // m) * m


# ----------------------------- Pallas kernel ------------------------------ #
def adr_kernel(*refs, n_trunk):
    """One batch tile of the full forward pass (fused trunk + fused heads).

    refs = (x_ref,
            W0, shift0, ..., W_{n-1}, shift_{n-1},   # trunk (BN+bias folded)
            HW1, HS1,                                # fused head Linear+BN
            HW2, HB2,                                # block-diag head Linear
            out_ref)
    Weights are bf16; activations are cast to bf16 at each dot, f32 accumulate.
    """
    x_ref = refs[0]
    out_ref = refs[-1]
    params = refs[1:-1]

    h = x_ref[...]                                   # (tb, X) f32

    # --- shared MLP trunk: (Linear+BN folded) -> ReLU (Dropout = id in eval)
    idx = 0
    for _ in range(n_trunk):
        w_ref, s_ref = params[idx], params[idx + 1]
        idx += 2
        z = jnp.dot(h.astype(jnp.bfloat16), w_ref[...],
                    preferred_element_type=jnp.float32)
        h = jnp.maximum(z + s_ref[...], 0.0)

    hw1_ref, hs1_ref, hw2_ref, hb2_ref = params[idx:idx + 4]

    # --- all task heads fused: one (Hp, Y*Hp) matmul + ReLU ...
    z = jnp.dot(h.astype(jnp.bfloat16), hw1_ref[...],
                preferred_element_type=jnp.float32)
    hh = jnp.maximum(z + hs1_ref[...], 0.0)          # (tb, Y*Hp) f32

    # ... then one block-diagonal (Y*Hp, Yp) matmul -> lane-dense logits.
    logits = jnp.dot(hh.astype(jnp.bfloat16), hw2_ref[...],
                     preferred_element_type=jnp.float32)
    logits = logits + hb2_ref[...]                   # (tb, Yp=128)
    out_ref[...] = jax.nn.sigmoid(logits)


# ------------------------------- wrapper ----------------------------------- #
def adr_forward_padded(x_p, packed, *, n_trunk, tb):
    """x_p: (Bp, X) input (rows padded to a multiple of tb, features unpadded)."""
    Bp, X = x_p.shape
    y_pad = packed[-1].shape[-1]

    def rep_spec(p):
        nd = p.ndim
        return pl.BlockSpec(p.shape, lambda i, _nd=nd: (0,) * _nd)

    in_specs = [pl.BlockSpec((tb, X), lambda i: (i, 0))]
    in_specs += [rep_spec(p) for p in packed]
    out_specs = pl.BlockSpec((tb, y_pad), lambda i: (i, 0))

    return pl.pallas_call(
        functools.partial(adr_kernel, n_trunk=n_trunk),
        out_shape=jax.ShapeDtypeStruct((Bp, y_pad), jnp.float32),
        grid=(Bp // tb,),
        in_specs=in_specs,
        out_specs=out_specs,
        compiler_params=pltpu.CompilerParams(
            dimension_semantics=("parallel",),
            vmem_limit_bytes=32 * 1024 * 1024),   # covers v5e's 16 MiB default
    )(x_p, *packed)


def _choose_tb(B, *, max_tb=2048, min_split_rows=256):
    """Pick a batch tile: single tile for tiny B, >=2 grid steps for large B
    (so v7x can shard the 'parallel' axis across both TensorCores)."""
    bp8 = _pad_to(max(B, SUBLANE), SUBLANE)
    if bp8 <= min_split_rows:
        return bp8                                  # one tile, minimal overhead
    n_tiles = max(2, pl.cdiv(bp8, max_tb))
    tb = _pad_to(pl.cdiv(bp8, n_tiles), SUBLANE)
    return min(tb, max_tb)


def adr_predict(x, packed, *, n_trunk, y_dim, max_tb=2048):
    """Run the kernel; slice the logical (B, Y_dim) output."""
    B, _ = x.shape
    tb = _choose_tb(B, max_tb=max_tb)
    Bp = _pad_to(B, tb)
    xf = x.astype(jnp.float32)
    if Bp != B:                                      # rows only; features unpadded
        xf = jnp.pad(xf, ((0, Bp - B), (0, 0)))
    out_p = adr_forward_padded(xf, packed, n_trunk=n_trunk, tb=tb)
    return out_p[:B, :y_dim]


# -------------------------- parameter preparation -------------------------- #
def prepare_params(raw):
    """Fold Linear bias + BN into weights, pad to 128 lanes, fuse heads.

    Weights -> bfloat16 (halves DMA bytes, native MXU rate); shifts stay f32.
    The first trunk weight keeps its unpadded input dim so x needs no lane pad.
    """
    trunk, heads = raw
    packed = []

    # Trunk layers: W' = W * scale,  shift' = b*scale + (beta - mean*scale)
    for li, (W, b, g, be, m, v) in enumerate(trunk):
        fin, fout = W.shape
        scale = g / jnp.sqrt(v + EPS)
        Wf = W * scale[None, :]
        shift = b * scale + (be - m * scale)
        fin_p = fin if li == 0 else _pad_to(fin, LANE)   # x stays unpadded in HBM
        fout_p = _pad_to(fout, LANE)
        Wp = (jnp.zeros((fin_p, fout_p), jnp.float32)
              .at[:fin, :fout].set(Wf).astype(jnp.bfloat16))
        sp = jnp.zeros((1, fout_p), jnp.float32).at[0, :fout].set(shift)
        packed += [Wp, sp]

    # Task heads: fuse all Y heads into two lane-dense matrices.
    H = heads[0][0].shape[0]
    Hp = _pad_to(H, LANE)
    Y = len(heads)
    Yp = _pad_to(Y, LANE)

    w1_blocks, s1_blocks = [], []
    hw2 = jnp.zeros((Y * Hp, Yp), jnp.float32)       # block-diagonal second Linear
    hb2 = jnp.zeros((1, Yp), jnp.float32)
    for j, (W1, b1, g1, be1, m1, v1, W2, b2) in enumerate(heads):
        scale = g1 / jnp.sqrt(v1 + EPS)
        W1f = W1 * scale[None, :]
        shift1 = b1 * scale + (be1 - m1 * scale)
        W1p = jnp.zeros((Hp, Hp), jnp.float32).at[:H, :H].set(W1f)
        s1p = jnp.zeros((1, Hp), jnp.float32).at[0, :H].set(shift1)
        w1_blocks.append(W1p)
        s1_blocks.append(s1p)
        w2col = jnp.zeros((Hp,), jnp.float32).at[:H].set(W2[:, 0])
        hw2 = hw2.at[j * Hp:(j + 1) * Hp, j].set(w2col)
        hb2 = hb2.at[0, j].set(b2[0])

    hw1 = jnp.concatenate(w1_blocks, axis=1).astype(jnp.bfloat16)   # (Hp, Y*Hp)
    hs1 = jnp.concatenate(s1_blocks, axis=1)                        # (1, Y*Hp) f32
    hw2 = hw2.astype(jnp.bfloat16)                                  # (Y*Hp, Yp)
    packed += [hw1, hs1, hw2, hb2]
    return tuple(packed)


def make_raw_params(key, x_dim, layout, y_dim):
    """Deterministic synthetic parameters matching the module's shapes.

    Linear weights stored as (in_features, out_features): y = x @ W + b.
    """
    keys = iter(jax.random.split(key, 4 * (len(layout) + y_dim) + 8))

    def lin(k, fan_in, fan_out):
        kw, kb = jax.random.split(k)
        bound = 1.0 / (fan_in ** 0.5)
        W = jax.random.uniform(kw, (fan_in, fan_out), jnp.float32, -bound, bound)
        b = jax.random.uniform(kb, (fan_out,), jnp.float32, -bound, bound)
        return W, b

    def bn(k, h):
        k1, k2, k3, k4 = jax.random.split(k, 4)
        gamma = jax.random.uniform(k1, (h,), jnp.float32, 0.5, 1.5)
        beta = 0.1 * jax.random.normal(k2, (h,), jnp.float32)
        mean = 0.1 * jax.random.normal(k3, (h,), jnp.float32)
        var = jax.random.uniform(k4, (h,), jnp.float32, 0.5, 1.5)
        return gamma, beta, mean, var

    dims = [x_dim] + list(layout)
    trunk = []
    for i in range(len(layout)):
        W, b = lin(next(keys), dims[i], dims[i + 1])
        g, be, m, v = bn(next(keys), dims[i + 1])
        trunk.append((W, b, g, be, m, v))

    H = layout[-1]
    heads = []
    for _ in range(y_dim):
        W1, b1 = lin(next(keys), H, H)
        g1, be1, m1, v1 = bn(next(keys), H)
        W2, b2 = lin(next(keys), H, 1)
        heads.append((W1, b1, g1, be1, m1, v1, W2, b2))
    return (tuple(trunk), tuple(heads))


# ----------------------------- pure-JAX reference --------------------------- #
def adr_reference(x, raw):
    trunk, heads = raw
    h = x
    for (W, b, g, be, m, v) in trunk:
        z = h @ W + b[None, :]
        z = (z - m[None, :]) / jnp.sqrt(v[None, :] + EPS) * g[None, :] + be[None, :]
        h = jnp.maximum(z, 0.0)                 # ReLU; Dropout = identity (eval)
    preds = []
    for (W1, b1, g1, be1, m1, v1, W2, b2) in heads:
        z = h @ W1 + b1[None, :]
        z = (z - m1[None, :]) / jnp.sqrt(v1[None, :] + EPS) * g1[None, :] + be1[None, :]
        hh = jnp.maximum(z, 0.0)
        preds.append(jax.nn.sigmoid(hh @ W2 + b2[None, :]))
    return jnp.concatenate(preds, axis=1)


# --------------------------------- main ------------------------------------ #
if __name__ == "__main__":
    X_DIM, Y_DIM = 32, 4
    LAYOUT = [64, 64, 32]

    key = jax.random.PRNGKey(0)
    k_x1, k_x2, k_p = jax.random.split(key, 3)

    raw = make_raw_params(k_p, X_DIM, LAYOUT, Y_DIM)
    packed = prepare_params(raw)   # fold BN/bias + pad + bf16, once (resident
                                   # across calls would need a serving loop).

    fwd = jax.jit(functools.partial(adr_predict, n_trunk=len(LAYOUT), y_dim=Y_DIM))

    # Small-batch latency case: single tile, grid=(1,).
    B1 = 16
    x1 = jax.random.normal(k_x1, (B1, X_DIM), jnp.float32)
    out1 = fwd(x1, packed)
    jax.block_until_ready(out1)
    ref1 = adr_reference(x1, raw)
    assert out1.shape == (B1, Y_DIM)
    assert jnp.allclose(out1, ref1, atol=2e-2, rtol=2e-2), "mismatch (B=16)"

    # Larger batch: exercises >=2 grid steps (v7x megacore path) + row padding.
    B2 = 300
    x2 = jax.random.normal(k_x2, (B2, X_DIM), jnp.float32)
    out2 = fwd(x2, packed)
    jax.block_until_ready(out2)
    ref2 = adr_reference(x2, raw)
    assert out2.shape == (B2, Y_DIM)
    assert jnp.allclose(out2, ref2, atol=2e-2, rtol=2e-2), "mismatch (B=300)"

    print("KERNEL_OK")
</pallas_src>

<mosaic_0001>
module attributes {stable_mosaic.version = 11 : i64} {
  func.func @adr_kernel(%arg0: i32, %arg1: memref<16x32xf32, #tpu.memory_space<vmem>>, %arg2: memref<32x128xbf16, #tpu.memory_space<vmem>>, %arg3: memref<1x128xf32, #tpu.memory_space<vmem>>, %arg4: memref<128x128xbf16, #tpu.memory_space<vmem>>, %arg5: memref<1x128xf32, #tpu.memory_space<vmem>>, %arg6: memref<128x128xbf16, #tpu.memory_space<vmem>>, %arg7: memref<1x128xf32, #tpu.memory_space<vmem>>, %arg8: memref<128x512xbf16, #tpu.memory_space<vmem>>, %arg9: memref<1x512xf32, #tpu.memory_space<vmem>>, %arg10: memref<512x128xbf16, #tpu.memory_space<vmem>>, %arg11: memref<1x128xf32, #tpu.memory_space<vmem>>, %arg12: memref<16x128xf32, #tpu.memory_space<vmem>>) attributes {dimension_semantics = [#tpu.dimension_semantics<parallel>], iteration_bounds = array<i64: 1>, scalar_prefetch = 0 : i64, scratch_operands = 0 : i64, tpu.core_type = #tpu.core_type<tc>, window_params = [{transform_indices = @transform_0, window_bounds = array<i64: 16, 32>}, {pipeline_mode = #tpu.pipeline_mode<synchronous>, transform_indices = @transform_1, window_bounds = array<i64: 32, 128>}, {pipeline_mode = #tpu.pipeline_mode<synchronous>, transform_indices = @transform_2, window_bounds = array<i64: 1, 128>}, {pipeline_mode = #tpu.pipeline_mode<synchronous>, transform_indices = @transform_3, window_bounds = array<i64: 128, 128>}, {pipeline_mode = #tpu.pipeline_mode<synchronous>, transform_indices = @transform_4, window_bounds = array<i64: 1, 128>}, {pipeline_mode = #tpu.pipeline_mode<synchronous>, transform_indices = @transform_5, window_bounds = array<i64: 128, 128>}, {pipeline_mode = #tpu.pipeline_mode<synchronous>, transform_indices = @transform_6, window_bounds = array<i64: 1, 128>}, {pipeline_mode = #tpu.pipeline_mode<synchronous>, transform_indices = @transform_7, window_bounds = array<i64: 128, 512>}, {pipeline_mode = #tpu.pipeline_mode<synchronous>, transform_indices = @transform_8, window_bounds = array<i64: 1, 512>}, {pipeline_mode = #tpu.pipeline_mode<synchronous>, transform_indices = @transform_9, window_bounds = array<i64: 512, 128>}, {pipeline_mode = #tpu.pipeline_mode<synchronous>, transform_indices = @transform_10, window_bounds = array<i64: 1, 128>}, {transform_indices = @transform_11, window_bounds = array<i64: 16, 128>}]} {
    %c0 = arith.constant 0 : index
    %c0_0 = arith.constant 0 : index
    %0 = vector.load %arg1[%c0, %c0_0] : memref<16x32xf32, #tpu.memory_space<vmem>>, vector<16x32xf32>
    %1 = arith.truncf %0 : vector<16x32xf32> to vector<16x32xbf16>
    %c0_1 = arith.constant 0 : index
    %c0_2 = arith.constant 0 : index
    %2 = vector.load %arg2[%c0_1, %c0_2] : memref<32x128xbf16, #tpu.memory_space<vmem>>, vector<32x128xbf16>
    %cst = arith.constant dense<0.000000e+00> : vector<16x128xf32>
    %3 = tpu.matmul %1, %2, %cst {dimension_numbers = #tpu.dot_dimension_numbers<[1], [0], [0], [1], [0, 0, 1, 1], [], []>} : vector<16x32xbf16>, vector<32x128xbf16>, vector<16x128xf32> -> vector<16x128xf32>
    %c0_3 = arith.constant 0 : index
    %c0_4 = arith.constant 0 : index
    %4 = vector.load %arg3[%c0_3, %c0_4] : memref<1x128xf32, #tpu.memory_space<vmem>>, vector<1x128xf32>
    %5 = vector.broadcast %4 : vector<1x128xf32> to vector<16x128xf32>
    %6 = arith.addf %3, %5 : vector<16x128xf32>
    %cst_5 = arith.constant 0.000000e+00 : f32
    %7 = vector.broadcast %cst_5 : f32 to vector<16x128xf32>
    %8 = arith.maximumf %6, %7 : vector<16x128xf32>
    %9 = arith.truncf %8 : vector<16x128xf32> to vector<16x128xbf16>
    %c0_6 = arith.constant 0 : index
    %c0_7 = arith.constant 0 : index
    %10 = vector.load %arg4[%c0_6, %c0_7] : memref<128x128xbf16, #tpu.memory_space<vmem>>, vector<128x128xbf16>
    %cst_8 = arith.constant dense<0.000000e+00> : vector<16x128xf32>
    %11 = tpu.matmul %9, %10, %cst_8 {dimension_numbers = #tpu.dot_dimension_numbers<[1], [0], [0], [1], [0, 0, 1, 1], [], []>} : vector<16x128xbf16>, vector<128x128xbf16>, vector<16x128xf32> -> vector<16x128xf32>
    %c0_9 = arith.constant 0 : index
    %c0_10 = arith.constant 0 : index
    %12 = vector.load %arg5[%c0_9, %c0_10] : memref<1x128xf32, #tpu.memory_space<vmem>>, vector<1x128xf32>
    %13 = vector.broadcast %12 : vector<1x128xf32> to vector<16x128xf32>
    %14 = arith.addf %11, %13 : vector<16x128xf32>
    %cst_11 = arith.constant 0.000000e+00 : f32
    %15 = vector.broadcast %cst_11 : f32 to vector<16x128xf32>
    %16 = arith.maximumf %14, %15 : vector<16x128xf32>
    %17 = arith.truncf %16 : vector<16x128xf32> to vector<16x128xbf16>
    %c0_12 = arith.constant 0 : index
    %c0_13 = arith.constant 0 : index
    %18 = vector.load %arg6[%c0_12, %c0_13] : memref<128x128xbf16, #tpu.memory_space<vmem>>, vector<128x128xbf16>
    %cst_14 = arith.constant dense<0.000000e+00> : vector<16x128xf32>
    %19 = tpu.matmul %17, %18, %cst_14 {dimension_numbers = #tpu.dot_dimension_numbers<[1], [0], [0], [1], [0, 0, 1, 1], [], []>} : vector<16x128xbf16>, vector<128x128xbf16>, vector<16x128xf32> -> vector<16x128xf32>
    %c0_15 = arith.constant 0 : index
    %c0_16 = arith.constant 0 : index
    %20 = vector.load %arg7[%c0_15, %c0_16] : memref<1x128xf32, #tpu.memory_space<vmem>>, vector<1x128xf32>
    %21 = vector.broadcast %20 : vector<1x128xf32> to vector<16x128xf32>
    %22 = arith.addf %19, %21 : vector<16x128xf32>
    %cst_17 = arith.constant 0.000000e+00 : f32
    %23 = vector.broadcast %cst_17 : f32 to vector<16x128xf32>
    %24 = arith.maximumf %22, %23 : vector<16x128xf32>
    %25 = arith.truncf %24 : vector<16x128xf32> to vector<16x128xbf16>
    %c0_18 = arith.constant 0 : index
    %c0_19 = arith.constant 0 : index
    %26 = vector.load %arg8[%c0_18, %c0_19] : memref<128x512xbf16, #tpu.memory_space<vmem>>, vector<128x512xbf16>
    %cst_20 = arith.constant dense<0.000000e+00> : vector<16x512xf32>
    %27 = tpu.matmul %25, %26, %cst_20 {dimension_numbers = #tpu.dot_dimension_numbers<[1], [0], [0], [1], [0, 0, 1, 1], [], []>} : vector<16x128xbf16>, vector<128x512xbf16>, vector<16x512xf32> -> vector<16x512xf32>
    %c0_21 = arith.constant 0 : index
    %c0_22 = arith.constant 0 : index
    %28 = vector.load %arg9[%c0_21, %c0_22] : memref<1x512xf32, #tpu.memory_space<vmem>>, vector<1x512xf32>
    %29 = vector.broadcast %28 : vector<1x512xf32> to vector<16x512xf32>
    %30 = arith.addf %27, %29 : vector<16x512xf32>
    %cst_23 = arith.constant 0.000000e+00 : f32
    %31 = vector.broadcast %cst_23 : f32 to vector<16x512xf32>
    %32 = arith.maximumf %30, %31 : vector<16x512xf32>
    %33 = arith.truncf %32 : vector<16x512xf32> to vector<16x512xbf16>
    %c0_24 = arith.constant 0 : index
    %c0_25 = arith.constant 0 : index
    %34 = vector.load %arg10[%c0_24, %c0_25] : memref<512x128xbf16, #tpu.memory_space<vmem>>, vector<512x128xbf16>
    %cst_26 = arith.constant dense<0.000000e+00> : vector<16x128xf32>
    %35 = tpu.matmul %33, %34, %cst_26 {dimension_numbers = #tpu.dot_dimension_numbers<[1], [0], [0], [1], [0, 0, 1, 1], [], []>} : vector<16x512xbf16>, vector<512x128xbf16>, vector<16x128xf32> -> vector<16x128xf32>
    %c0_27 = arith.constant 0 : index
    %c0_28 = arith.constant 0 : index
    %36 = vector.load %arg11[%c0_27, %c0_28] : memref<1x128xf32, #tpu.memory_space<vmem>>, vector<1x128xf32>
    %37 = vector.broadcast %36 : vector<1x128xf32> to vector<16x128xf32>
    %38 = arith.addf %35, %37 : vector<16x128xf32>
    %39 = arith.negf %38 : vector<16x128xf32>
    %40 = math.exp %39 : vector<16x128xf32>
    %cst_29 = arith.constant 1.000000e+00 : f32
    %41 = vector.broadcast %cst_29 : f32 to vector<16x128xf32>
    %42 = arith.addf %41, %40 : vector<16x128xf32>
    %43 = arith.divf %41, %42 : vector<16x128xf32>
    %c0_30 = arith.constant 0 : index
    %c0_31 = arith.constant 0 : index
    %44 = vector.load %arg12[%c0_30, %c0_31] : memref<16x128xf32, #tpu.memory_space<vmem>>, vector<16x128xf32>
    tpu.vector_store %arg12[%c0_30, %c0_31], %43 {strides = array<i32>} : memref<16x128xf32, #tpu.memory_space<vmem>>, vector<16x128xf32>,
    return
  }
  func.func @transform_0(%arg0: i32) -> (i32, i32) {
    %c0_i32 = arith.constant 0 : i32
    %c0_i32_0 = arith.constant 0 : i32
    return %arg0, %c0_i32 : i32, i32
  }
  func.func @transform_1(%arg0: i32) -> (i32, i32) {
    %c0_i32 = arith.constant 0 : i32
    %c0_i32_0 = arith.constant 0 : i32
    %c0_i32_1 = arith.constant 0 : i32
    return %c0_i32, %c0_i32_0 : i32, i32
  }
  func.func @transform_2(%arg0: i32) -> (i32, i32) {
    %c0_i32 = arith.constant 0 : i32
    %c0_i32_0 = arith.constant 0 : i32
    %c0_i32_1 = arith.constant 0 : i32
    return %c0_i32, %c0_i32_0 : i32, i32
  }
  func.func @transform_3(%arg0: i32) -> (i32, i32) {
    %c0_i32 = arith.constant 0 : i32
    %c0_i32_0 = arith.constant 0 : i32
    %c0_i32_1 = arith.constant 0 : i32
    return %c0_i32, %c0_i32_0 : i32, i32
  }
  func.func @transform_4(%arg0: i32) -> (i32, i32) {
    %c0_i32 = arith.constant 0 : i32
    %c0_i32_0 = arith.constant 0 : i32
    %c0_i32_1 = arith.constant 0 : i32
    return %c0_i32, %c0_i32_0 : i32, i32
  }
  func.func @transform_5(%arg0: i32) -> (i32, i32) {
    %c0_i32 = arith.constant 0 : i32
    %c0_i32_0 = arith.constant 0 : i32
    %c0_i32_1 = arith.constant 0 : i32
    return %c0_i32, %c0_i32_0 : i32, i32
  }
  func.func @transform_6(%arg0: i32) -> (i32, i32) {
    %c0_i32 = arith.constant 0 : i32
    %c0_i32_0 = arith.constant 0 : i32
    %c0_i32_1 = arith.constant 0 : i32
    return %c0_i32, %c0_i32_0 : i32, i32
  }
  func.func @transform_7(%arg0: i32) -> (i32, i32) {
    %c0_i32 = arith.constant 0 : i32
    %c0_i32_0 = arith.constant 0 : i32
    %c0_i32_1 = arith.constant 0 : i32
    return %c0_i32, %c0_i32_0 : i32, i32
  }
  func.func @transform_8(%arg0: i32) -> (i32, i32) {
    %c0_i32 = arith.constant 0 : i32
    %c0_i32_0 = arith.constant 0 : i32
    %c0_i32_1 = arith.constant 0 : i32
    return %c0_i32, %c0_i32_0 : i32, i32
  }
  func.func @transform_9(%arg0: i32) -> (i32, i32) {
    %c0_i32 = arith.constant 0 : i32
    %c0_i32_0 = arith.constant 0 : i32
    %c0_i32_1 = arith.constant 0 : i32
    return %c0_i32, %c0_i32_0 : i32, i32
  }
  func.func @transform_10(%arg0: i32) -> (i32, i32) {
    %c0_i32 = arith.constant 0 : i32
    %c0_i32_0 = arith.constant 0 : i32
    %c0_i32_1 = arith.constant 0 : i32
    return %c0_i32, %c0_i32_0 : i32, i32
  }
  func.func @transform_11(%arg0: i32) -> (i32, i32) {
    %c0_i32 = arith.constant 0 : i32
    %c0_i32_0 = arith.constant 0 : i32
    return %arg0, %c0_i32 : i32, i32
  }
}

</mosaic_0001>

<bundles_post_ra>
// kernel: adr_predict.1
= control target key start
LH: loop header
LB: loop body
LE: loop exit
PB: predicated region body
PF: predicated region fallthrough
CT: control target
= control target key end

     0   :  { %16 = vsyncpa [#allocation3], 0  ;;  %s1771_s0 = inlined_call_operand.hbm [shape: f32[16,32], index: 0, kind: input, shape index: {}]   ;;  %s1772_s1 = inlined_call_operand.hbm [shape: bf16[32,128], index: 1, kind: input, shape index: {}]   ;;  %s1773_s2 = inlined_call_operand.vmem [shape: f32[1,128], index: 2, kind: input, shape index: {}]   ;;  %s1774_s3 = inlined_call_operand.hbm [shape: bf16[128,128], index: 3, kind: input, shape index: {}]   ;;  %s1775_s4 = inlined_call_operand.vmem [shape: f32[1,128], index: 4, kind: input, shape index: {}]   ;;  %s1776_s5 = inlined_call_operand.hbm [shape: bf16[128,128], index: 5, kind: input, shape index: {}]   ;;  %s1777_s6 = inlined_call_operand.vmem [shape: f32[1,128], index: 6, kind: input, shape index: {}]   ;;  %s1778_s7 = inlined_call_operand.hbm [shape: bf16[128,512], index: 7, kind: input, shape index: {}]   ;;  %s1779_s8 = inlined_call_operand.vmem [shape: f32[1,512], index: 8, kind: input, shape index: {}]   ;;  %s1780_s9 = inlined_call_operand.hbm [shape: bf16[512,128], index: 9, kind: input, shape index: {}]   ;;  %s1781_s10 = inlined_call_operand.vmem [shape: f32[1,128], index: 10, kind: input, shape index: {}]   ;;  %s1782_s11 = inlined_call_operand.vmem [shape: f32[16,128], index: 11, kind: output, shape index: {}]  }
   0x1   :  { %17 = vsyncpa [#allocation5], 0 }
   0x2   :  { %18 = vsyncpa [#allocation8], 0 }
   0x3   :  { %19 = vsyncpa [#allocation11], 0  ;;  %s1567_s17 = smov [#allocation4]   ;;  %s1427_s21 = scalar_lea.hbm %s1772_s1, 256 }
   0x4   :  { %s37_s18 = sshll.u32 %s1567_s17, 4  ;;  %p1428_p0 = scmp.ne.s32.totalorder %s1772_s1, %s1427_s21  ;;  %s38_s18 = int_to_ptr.vmem [resolvable:$true] %s37_s18 }
   0x5   :  { %p1431_p1 = scmp.lt.u32.totalorder %s1427_s21, %s1772_s1 }
   0x7   :  { %p1433_p2 = pnand %p1431_p1, %p1428_p0 }
   0x9   :  { %1436 = shalt.err (!%p1433_p2)
}
   0xa   :  { %s1437_s26 = scalar_lea.vmem %s38_s18, 256  ;;  %p1442_p4 = scmp.lt.s32.totalorder %s38_s18, %s38_s18 }
   0xb   :  { %p1438_p3 = scmp.ne.s32.totalorder %s38_s18, %s1437_s26  ;;  %p1443_p5 = scmp.lt.s32.totalorder %s1437_s26, %s1437_s26 }
   0xd   :  { %p1444_p6 = por %p1443_p5, %p1442_p4 }
   0xf   :  { %p1445_p7 = pnand %p1444_p6, %p1438_p3 }
  0x11   :  { %1448 = shalt.err (!%p1445_p7)
}
  0x12   :  { %s1568_s27 = smov 64   ;;  %s1569_s28 = smov 4  }
  0x13   :  { %43 = dma.hbm_to_vmem [thread:$0]  %s1772_s1, 256, %s38_s18, [#allocation5], %s1568_s27, %s1568_s27, %s1569_s28  }
  0x14   :  { %s1570_s12 = smov [#allocation7]   ;;  %s1571_s14 = smov [#allocation2]  }
  0x15   :  { %s65_s13 = sshll.u32 %s1570_s12, 4  ;;  %s25_s15 = sshll.u32 %s1571_s14, 4  ;;  %s66_s13 = int_to_ptr.vmem [resolvable:$true] %s65_s13  ;;  %s26_s15 = int_to_ptr.vmem [resolvable:$true] %s25_s15 }
  0x16   :  { %s1449_s19 = scalar_lea.hbm %s1776_s5, 1024 }
  0x17   :  { %p1450_p8 = scmp.ne.s32.totalorder %s1776_s5, %s1449_s19  ;;  %p1453_p9 = scmp.lt.u32.totalorder %s1449_s19, %s1776_s5 }
  0x19   :  { %p1455_p10 = pnand %p1453_p9, %p1450_p8 }
  0x1b   :  { %1458 = shalt.err (!%p1455_p10)
}
  0x1c   :  { %s1459_s1 = scalar_lea.vmem %s66_s13, 1024  ;;  %p1464_p12 = scmp.lt.s32.totalorder %s66_s13, %s66_s13 }
  0x1d   :  { %p1460_p11 = scmp.ne.s32.totalorder %s66_s13, %s1459_s1  ;;  %p1465_p13 = scmp.lt.s32.totalorder %s1459_s1, %s1459_s1 }
  0x1f   :  { %p1466_p0 = por %p1465_p13, %p1464_p12 }
  0x21   :  { %p1467_p1 = pnand %p1466_p0, %p1460_p11 }
  0x23   :  { %1470 = shalt.err (!%p1467_p1)
}
  0x24   :  { %71 = dma.hbm_to_vmem [thread:$0]  %s1776_s5, 1024, %s66_s13, [#allocation8], %s1568_s27, %s1568_s27, %s1569_s28  }
  0x25   :  { %s1471_s29 = scalar_lea.hbm %s1771_s0, 256 }
  0x26   :  { %p1472_p2 = scmp.ne.s32.totalorder %s1771_s0, %s1471_s29  ;;  %p1475_p3 = scmp.lt.u32.totalorder %s1471_s29, %s1771_s0 }
  0x28   :  { %p1477_p4 = pnand %p1475_p3, %p1472_p2 }
  0x2a   :  { %1480 = shalt.err (!%p1477_p4)
}
  0x2b   :  { %s1481_s17 = scalar_lea.vmem %s26_s15, 256  ;;  %p1486_p6 = scmp.lt.s32.totalorder %s26_s15, %s26_s15 }
  0x2c   :  { %p1482_p5 = scmp.ne.s32.totalorder %s26_s15, %s1481_s17  ;;  %p1487_p7 = scmp.lt.s32.totalorder %s1481_s17, %s1481_s17 }
  0x2e   :  { %p1488_p8 = por %p1487_p7, %p1486_p6 }
  0x30   :  { %p1489_p9 = pnand %p1488_p8, %p1482_p5 }
  0x32   :  { %1492 = shalt.err (!%p1489_p9)
}
  0x33   :  { %s1572_s5 = smov 128   ;;  %s1573_s13 = smov 8  }
  0x34   :  { %31 = dma.hbm_to_vmem [thread:$0]  %s1771_s0, 256, %s26_s15, [#allocation3], %s1572_s5, %s1572_s5, %s1573_s13  }
  0x35   :  { %s1574_s21 = smov [#allocation6]   ;;  %s1575_s23 = smov [#allocation9]  }
  0x36   :  { %s51_s22 = sshll.u32 %s1574_s21, 4  ;;  %s79_s1 = sshll.u32 %s1575_s23, 4  ;;  %s52_s22 = int_to_ptr.vmem [resolvable:$true] %s51_s22  ;;  %s80_s1 = int_to_ptr.vmem [resolvable:$true] %s79_s1 }
  0x37   :  { %s1493_s25 = scalar_lea.hbm %s1774_s3, 1024 }
  0x38   :  { %p1494_p10 = scmp.ne.s32.totalorder %s1774_s3, %s1493_s25  ;;  %p1497_p11 = scmp.lt.u32.totalorder %s1493_s25, %s1774_s3 }
  0x3a   :  { %p1499_p12 = pnand %p1497_p11, %p1494_p10 }
  0x3c   :  { %1502 = shalt.err (!%p1499_p12)
}
  0x3d   :  { %s1503_s0 = scalar_lea.vmem %s52_s22, 1024  ;;  %p1508_p0 = scmp.lt.s32.totalorder %s52_s22, %s52_s22 }
  0x3e   :  { %p1504_p13 = scmp.ne.s32.totalorder %s52_s22, %s1503_s0  ;;  %p1509_p1 = scmp.lt.s32.totalorder %s1503_s0, %s1503_s0 }
  0x40   :  { %p1510_p2 = por %p1509_p1, %p1508_p0 }
  0x42   :  { %p1511_p3 = pnand %p1510_p2, %p1504_p13 }
  0x44   :  { %1514 = shalt.err (!%p1511_p3)
}
  0x45   :  { %57 = dma.hbm_to_vmem [thread:$0]  %s1774_s3, 1024, %s52_s22, [#allocation5], %s1568_s27, %s1568_s27, %s1569_s28  }
  0x46   :  { %s1515_s5 = scalar_lea.hbm %s1778_s7, 4096 }
  0x47   :  { %p1516_p4 = scmp.ne.s32.totalorder %s1778_s7, %s1515_s5  ;;  %p1519_p5 = scmp.lt.u32.totalorder %s1515_s5, %s1778_s7 }
  0x49   :  { %p1521_p6 = pnand %p1519_p5, %p1516_p4 }
  0x4b   :  { %1524 = shalt.err (!%p1521_p6)
}
  0x4c   :  { %s1525_s23 = scalar_lea.vmem %s80_s1, 4096  ;;  %p1530_p8 = scmp.lt.s32.totalorder %s80_s1, %s80_s1 }
  0x4d   :  { %p1526_p7 = scmp.ne.s32.totalorder %s80_s1, %s1525_s23  ;;  %p1531_p9 = scmp.lt.s32.totalorder %s1525_s23, %s1525_s23 }
  0x4f   :  { %p1532_p10 = por %p1531_p9, %p1530_p8 }
  0x51   :  { %p1533_p11 = pnand %p1532_p10, %p1526_p7 }
  0x53   :  { %1536 = shalt.err (!%p1533_p11)
}
  0x54   :  { %s1576_s3 = smov 256   ;;  %s1577_s22 = smov 16  }
  0x55   :  { %85 = dma.hbm_to_vmem [thread:$0]  %s1778_s7, 4096, %s80_s1, [#allocation8], %s1576_s3, %s1576_s3, %s1577_s22  }
  0x56   :  { %s1578_s25 = smov [#allocation10]   ;;  %s1537_s12 = scalar_lea.hbm %s1780_s9, 4096 }
  0x57   :  { %s93_s26 = sshll.u32 %s1578_s25, 4  ;;  %p1538_p12 = scmp.ne.s32.totalorder %s1780_s9, %s1537_s12  ;;  %s94_s26 = int_to_ptr.vmem [resolvable:$true] %s93_s26 }
  0x58   :  { %p1541_p13 = scmp.lt.u32.totalorder %s1537_s12, %s1780_s9 }
  0x5a   :  { %p1543_p0 = pnand %p1541_p13, %p1538_p12 }
  0x5c   :  { %1546 = shalt.err (!%p1543_p0)
}
  0x5d   :  { %s1547_s17 = scalar_lea.vmem %s94_s26, 4096  ;;  %p1552_p2 = scmp.lt.s32.totalorder %s94_s26, %s94_s26 }
  0x5e   :  { %p1548_p1 = scmp.ne.s32.totalorder %s94_s26, %s1547_s17  ;;  %p1553_p3 = scmp.lt.s32.totalorder %s1547_s17, %s1547_s17 }
  0x60   :  { %p1554_p4 = por %p1553_p3, %p1552_p2 }
  0x62   :  { %p1555_p5 = pnand %p1554_p4, %p1548_p1 }
  0x64   :  { %1558 = shalt.err (!%p1555_p5)
}
  0x65   :  { %99 = dma.hbm_to_vmem [thread:$0]  %s1780_s9, 4096, %s94_s26, [#allocation11], %s1568_s27, %s1568_s27, %s1569_s28  }
  0x66   :  { %1559 = dma.done.wait [#allocation3], 256  }
  0x67   :  { %1560 = vsyncadd [#allocation3], 4294967040 }
  0x68   :  { %1561 = dma.done.wait [#allocation5], 1280  }
  0x69   :  { %1562 = vsyncadd [#allocation5], 4294966016 }
  0x6a   :  { %1563 = dma.done.wait [#allocation8], 5120  }
  0x6b   :  { %1564 = vsyncadd [#allocation8], 4294962176 }
  0x6c   :  { %1565 = dma.done.wait [#allocation11], 4096  }
  0x6d   :  { %1566 = vsyncadd [#allocation11], 4294963200  ;;  %v1579_v0 = vmov 0.0   ;;  %vm1580_vm0 = vmmov 0   ;;  %v1321_v1 = vld [vmem:[#allocation4] sm:$0xff]   ;;  %v1322_v2 = vld [vmem:[#allocation4 + $0x8] sm:$0xff]  }
  0x6e   :  { %1258 = vmatprep.subr.bf16.mxu0 %v1579_v0  ;;  %1262 = vmatprep.mubr.msk.bf16.mxu0 %vm1580_vm0, %v1579_v0  ;;  %v121_v3 = vld [vmem:[#allocation2] sm:$0xff]  ;;  %v122_v4 = vld [vmem:[#allocation2 + $0x8] sm:$0xff]  ;;  %vm147_vm1 = vcmask 261120   ;;  %v1325_v8 = vld [vmem:[#allocation6 + $0x10] sm:$0xff]  }
  0x6f   :  { %1266 = vmatprep.subr.bf16.mxu1 %v1579_v0  ;;  %1282 = vmatprep.mubr.msk.bf16.mxu1 %vm1580_vm0, %v1579_v0  ;;  %v1323_v5 = vld [vmem:[#allocation6] sm:$0xff]   ;;  %v123_v6 = vpack.c.bf16 %v122_v4, %v121_v3  ;;  %v1324_v7 = vld [vmem:[#allocation6 + $0x8] sm:$0xff]   ;;  %v1326_v9 = vld [vmem:[#allocation6 + $0x18] sm:$0xff]  }
  0x70   :  { %1259 = vmatpush3.bf16.msra.mxu0 %v1321_v1  ;;  %1267 = vmatpush3.bf16.msra.mxu1 %v1323_v5  ;;  %v1327_v10 = vld [vmem:[#allocation6 + $0x20] sm:$0xff]   ;;  %v1328_v11 = vld [vmem:[#allocation6 + $0x28] sm:$0xff]   ;;  %v1329_v12 = vld [vmem:[#allocation6 + $0x30] sm:$0xff]  }
  0x71   :  { %1260 = vmatprep.subr.bf16.mxu0 %v1579_v0  ;;  %1268 = vmatprep.subr.bf16.mxu1 %v1579_v0  ;;  %v1330_v13 = vld [vmem:[#allocation6 + $0x38] sm:$0xff]   ;;  %v1331_v14 = vld [vmem:[#allocation7] sm:$0xff]   ;;  %v1332_v15 = vld [vmem:[#allocation7 + $0x8] sm:$0xff]  }
  0x72   :  { %v1333_v16 = vld [vmem:[#allocation7 + $0x10] sm:$0xff]   ;;  %v1334_v17 = vld [vmem:[#allocation7 + $0x18] sm:$0xff]   ;;  %v1335_v18 = vld [vmem:[#allocation7 + $0x20] sm:$0xff]  }
  0x73   :  { %v1336_v19 = vld [vmem:[#allocation7 + $0x28] sm:$0xff]   ;;  %v1104_v20 = vld [vmem:[%s1773_s2] ss:$0 sm:$0xff]  ;;  %v1337_v30 = vld [vmem:[#allocation7 + $0x30] sm:$0xff]  }
  0x74   :  { %1261 = vmatpush3.bf16.msra.mxu0 %v1322_v2  ;;  %1269 = vmatpush3.bf16.msra.mxu1 %v1324_v7  ;;  %v1338_v31 = vld [vmem:[#allocation7 + $0x38] sm:$0xff]   ;;  %v1339_v32 = vld [vmem:[#allocation9] ss:$16 sps:$4 sm:$0xff]   ;;  %v1341_v33 = vld [vmem:[#allocation9 + $0x4] ss:$16 sps:$4 sm:$0xff]  }
  0x75   :  { %1286 = vmatprep.subr.bf16.mxu0 %v1579_v0  ;;  %1270 = vmatprep.subr.bf16.mxu1 %v1579_v0  ;;  %v1344_v34 = vld [vmem:[#allocation9 + $0xc] ss:$16 sps:$4 sm:$0xff]   ;;  %v1347_v35 = vld [vmem:[#allocation9 + $0x24] ss:$16 sps:$4 sm:$0xff]   ;;  %v1345_v36 = vld [vmem:[#allocation9 + $0x20] ss:$16 sps:$4 sm:$0xff]  }
  0x76   :  { %v1353_v37 = vld [vmem:[#allocation9 + $0x44] ss:$16 sps:$4 sm:$0xff]   ;;  %v1351_v38 = vld [vmem:[#allocation9 + $0x40] ss:$16 sps:$4 sm:$0xff]   ;;  %v1342_v54 = vld [vmem:[#allocation9 + $0x8] ss:$16 sps:$4 sm:$0xff]  }
  0x77   :  { %1263 = vmatmul.mubr.msk.bf16.vlgmr.msra.gmra.mrb[0].mxu0 %vm147_vm1, %v123_v6  ;;  %v1359_v39 = vld [vmem:[#allocation9 + $0x64] ss:$16 sps:$4 sm:$0xff]   ;;  %v1357_v40 = vld [vmem:[#allocation9 + $0x60] ss:$16 sps:$4 sm:$0xff]   ;;  %v1350_v56 = vld [vmem:[#allocation9 + $0x2c] ss:$16 sps:$4 sm:$0xff]  }
  0x78   :  { %1302 = vmatprep.mubr.msk.bf16.mxu0 %vm1580_vm0, %v1579_v0  ;;  %1271 = vmatpush3.bf16.msra.mxu1 %v1325_v8  ;;  %v1365_v41 = vld [vmem:[#allocation9 + $0x84] ss:$16 sps:$4 sm:$0xff]   ;;  %v1363_v42 = vld [vmem:[#allocation9 + $0x80] ss:$16 sps:$4 sm:$0xff]   ;;  %v1348_v57 = vld [vmem:[#allocation9 + $0x28] ss:$16 sps:$4 sm:$0xff]  }
  0x79   :  { %1272 = vmatprep.subr.bf16.mxu1 %v1579_v0  ;;  %1287 = vmatpush3.bf16.msra.mxu0 %v1331_v14  ;;  %v1371_v43 = vld [vmem:[#allocation9 + $0xa4] ss:$16 sps:$4 sm:$0xff]   ;;  %v1369_v44 = vld [vmem:[#allocation9 + $0xa0] ss:$16 sps:$4 sm:$0xff]   ;;  %v1356_v58 = vld [vmem:[#allocation9 + $0x4c] ss:$16 sps:$4 sm:$0xff]  }
  0x7a   :  { %1288 = vmatprep.subr.bf16.mxu0 %v1579_v0  ;;  %v1108_v45 = vld [vmem:[%s1775_s4] ss:$0 sm:$0xff]  ;;  %v1354_v59 = vld [vmem:[#allocation9 + $0x48] ss:$16 sps:$4 sm:$0xff]   ;;  %v1362_v60 = vld [vmem:[#allocation9 + $0x6c] ss:$16 sps:$4 sm:$0xff]  }
  0x7b   :  { %v1360_v61 = vld [vmem:[#allocation9 + $0x68] ss:$16 sps:$4 sm:$0xff]   ;;  %v1368_v62 = vld [vmem:[#allocation9 + $0x8c] ss:$16 sps:$4 sm:$0xff]   ;;  %v1377_v2 = vld [vmem:[#allocation9 + $0xc4] ss:$16 sps:$4 sm:$0xff]  }
  0x7c   :  { %1273 = vmatpush3.bf16.msra.mxu1 %v1326_v9  ;;  %v1366_v63 = vld [vmem:[#allocation9 + $0x88] ss:$16 sps:$4 sm:$0xff]   ;;  %v1380_v3 = vld [vmem:[#allocation9 + $0xcc] ss:$16 sps:$4 sm:$0xff]   ;;  %v1375_v4 = vld [vmem:[#allocation9 + $0xc0] ss:$16 sps:$4 sm:$0xff]  }
  0x7d   :  { %1274 = vmatprep.subr.bf16.mxu1 %v1579_v0  ;;  %1289 = vmatpush3.bf16.msra.mxu0 %v1332_v15  ;;  %v1372_v1 = vld [vmem:[#allocation9 + $0xa8] ss:$16 sps:$4 sm:$0xff]   ;;  %v1383_v6 = vld [vmem:[#allocation9 + $0xe4] ss:$16 sps:$4 sm:$0xff]   ;;  %v1386_v7 = vld [vmem:[#allocation9 + $0xec] ss:$16 sps:$4 sm:$0xff]  }
  0x7e   :  { %1290 = vmatprep.subr.bf16.mxu0 %v1579_v0  ;;  %v1378_v5 = vld [vmem:[#allocation9 + $0xc8] ss:$16 sps:$4 sm:$0xff]   ;;  %v1381_v8 = vld [vmem:[#allocation9 + $0xe0] ss:$16 sps:$4 sm:$0xff]  }
  0x7f   :  { %v1384_v9 = vld [vmem:[#allocation9 + $0xe8] ss:$16 sps:$4 sm:$0xff]  }
  0x80   :  { %1275 = vmatpush3.bf16.msra.mxu1 %v1327_v10  ;;  %v1581_v10 = vmov 0  }
  0x81   :  { %1276 = vmatprep.subr.bf16.mxu1 %v1579_v0  ;;  %1291 = vmatpush3.bf16.msra.mxu0 %v1333_v16 }
  0x82   :  { %1292 = vmatprep.subr.bf16.mxu0 %v1579_v0 }
  0x84   :  { %1277 = vmatpush3.bf16.msra.mxu1 %v1328_v11  ;;  %v1387_v11 = vld [vmem:[#allocation10 + $0x40] sm:$0xff]  }
  0x85   :  { %1278 = vmatprep.subr.bf16.mxu1 %v1579_v0  ;;  %1293 = vmatpush3.bf16.msra.mxu0 %v1334_v17 }
  0x86   :  { %1294 = vmatprep.subr.bf16.mxu0 %v1579_v0 }
  0x88   :  { %1279 = vmatpush3.bf16.msra.mxu1 %v1329_v12  ;;  %v1388_v12 = vld [vmem:[#allocation10 + $0xc0] sm:$0xff]  }
  0x89   :  { %1280 = vmatprep.subr.bf16.mxu1 %v1579_v0  ;;  %1295 = vmatpush3.bf16.msra.mxu0 %v1335_v18 }
  0x8a   :  { %1296 = vmatprep.subr.bf16.mxu0 %v1579_v0 }
  0x8c   :  { %1281 = vmatpush3.bf16.msra.mxu1 %v1330_v13  ;;  %v1117_v13 = vld [vmem:[%s1777_s6] ss:$0 sm:$0xff] }
  0x8d   :  { %1297 = vmatpush3.bf16.msra.mxu0 %v1336_v19  ;;  %639 = vmatprep.subr.bf16.mxu1 %v1341_v33  ;;  %v1399_v33 = vld [vmem:[#allocation10 + $0x58] sm:$0xff]  }
  0x8e   :  { %1298 = vmatprep.subr.bf16.mxu0 %v1579_v0 }
  0x91   :  { %1299 = vmatpush3.bf16.msra.mxu0 %v1337_v30  ;;  %v1396_v30 = vld [vmem:[#allocation10 + $0xd0] sm:$0xff]  }
  0x92   :  { %1300 = vmatprep.subr.bf16.mxu0 %v1579_v0  ;;  %v1374_v0 = vld [vmem:[#allocation9 + $0xac] ss:$16 sps:$4 sm:$0xff]  }
  0x95   :  { %1301 = vmatpush3.bf16.msra.mxu0 %v1338_v31  ;;  %v1397_v31 = vld [vmem:[#allocation10 + $0x10] sm:$0xff]  }
  0x96   :  { %682 = vmatprep.subr.bf16.mxu0 %v1344_v34  ;;  %v1400_v34 = vld [vmem:[#allocation10 + $0xd8] sm:$0xff]  }
 0x14a   :  { %v185_v21 = vpop.f32.mrb[0].mxu0 }
 0x14b   :  { %v186_v22 = vadd.f32 %v1104_v20, %v185_v21  ;;  %v1264_v23 = vpop.f32.mrb[1].mxu0 }
 0x14c   :  { %v188_v24 = vpop.f32.mrb[2].mxu0  ;;  %v1390_v23 = vld [vmem:[#allocation10 + $0x80] sm:$0xff]  }
 0x14d   :  { %v189_v25 = vadd.f32 %v1104_v20, %v188_v24  ;;  %v1265_v26 = vpop.f32.mrb[3].mxu0  ;;  %v192_v27 = vmax.f32 %v186_v22, 0.0  ;;  %v1389_v22 = vld [vmem:[#allocation10] sm:$0xff]  }
 0x14e   :  { %v1392_v26 = vld [vmem:[#allocation10 + $0xc8] sm:$0xff]  }
 0x14f   :  { %v193_v28 = vmax.f32 %v189_v25, 0.0  ;;  %v1391_v25 = vld [vmem:[#allocation10 + $0x48] sm:$0xff]  }
 0x151   :  { %v194_v29 = vpack.c.bf16 %v193_v28, %v192_v27  ;;  %v1393_v27 = vld [vmem:[#allocation10 + $0x8] sm:$0xff]  }
 0x152   :  { %v1394_v28 = vld [vmem:[#allocation10 + $0x88] sm:$0xff]  }
 0x153   :  { %1283 = vmatmul.mubr.bf16.vlgmr.msra.gmra.mrb[0].mxu1 %v194_v29  ;;  %v1395_v29 = vld [vmem:[#allocation10 + $0x50] sm:$0xff]  }
 0x154   :  { %640 = vmatpush1.bf16.msra.mxu1 %v1339_v32  ;;  %671 = vmatprep.mubr.bf16.mxu1 %v1581_v10  ;;  %v1398_v32 = vld [vmem:[#allocation10 + $0x90] sm:$0xff]  }
 0x155   :  { %641 = vmatprep.subr.bf16.mxu1 %v1347_v35  ;;  %v1401_v35 = vld [vmem:[#allocation10 + $0x18] sm:$0xff]  }
 0x158   :  { %642 = vmatpush1.bf16.msra.mxu1 %v1345_v36  ;;  %v1402_v36 = vld [vmem:[#allocation10 + $0x98] sm:$0xff]  }
 0x159   :  { %643 = vmatprep.subr.bf16.mxu1 %v1353_v37  ;;  %v1403_v37 = vld [vmem:[#allocation10 + $0x60] sm:$0xff]  }
 0x15c   :  { %644 = vmatpush1.bf16.msra.mxu1 %v1351_v38  ;;  %v1404_v38 = vld [vmem:[#allocation10 + $0xe0] sm:$0xff]  }
 0x15d   :  { %645 = vmatprep.subr.bf16.mxu1 %v1359_v39  ;;  %v1405_v39 = vld [vmem:[#allocation10 + $0x20] sm:$0xff]  }
 0x160   :  { %646 = vmatpush1.bf16.msra.mxu1 %v1357_v40  ;;  %v1406_v40 = vld [vmem:[#allocation10 + $0xa0] sm:$0xff]  }
 0x161   :  { %647 = vmatprep.subr.bf16.mxu1 %v1365_v41  ;;  %v1407_v41 = vld [vmem:[#allocation10 + $0x68] sm:$0xff]  }
 0x164   :  { %648 = vmatpush1.bf16.msra.mxu1 %v1363_v42  ;;  %v1408_v42 = vld [vmem:[#allocation10 + $0xe8] sm:$0xff]  }
 0x165   :  { %649 = vmatprep.subr.bf16.mxu1 %v1371_v43  ;;  %v1409_v43 = vld [vmem:[#allocation10 + $0x28] sm:$0xff]  }
 0x168   :  { %650 = vmatpush1.bf16.msra.mxu1 %v1369_v44  ;;  %v1410_v44 = vld [vmem:[#allocation10 + $0xa8] sm:$0xff]  }
 0x169   :  { %651 = vmatprep.subr.bf16.mxu1 %v1377_v2 }
 0x16c   :  { %652 = vmatpush1.bf16.msra.mxu1 %v1375_v4 }
 0x16d   :  { %653 = vmatprep.subr.bf16.mxu1 %v1383_v6 }
 0x170   :  { %654 = vmatpush1.bf16.msra.mxu1 %v1381_v8 }
 0x171   :  { %1214 = vmatprep.subr.bf16.mxu1 %v1387_v11 }
 0x226   :  { %v300_v46 = vpop.f32.mrb[0].mxu1 }
 0x227   :  { %v301_v47 = vadd.f32 %v1108_v45, %v300_v46  ;;  %v1284_v48 = vpop.f32.mrb[1].mxu1  ;;  %v1412_v46 = vld [vmem:[#allocation10 + $0xf0] sm:$0xff]  }
 0x228   :  { %v303_v49 = vpop.f32.mrb[2].mxu1  ;;  %v1414_v48 = vld [vmem:[#allocation10 + $0xb0] sm:$0xff]  }
 0x229   :  { %v304_v50 = vadd.f32 %v1108_v45, %v303_v49  ;;  %v1285_v51 = vpop.f32.mrb[3].mxu1  ;;  %v307_v52 = vmax.f32 %v301_v47, 0.0  ;;  %v1411_v45 = vld [vmem:[#allocation10 + $0x70] sm:$0xff]   ;;  %v1415_v49 = vld [vmem:[#allocation10 + $0x78] sm:$0xff]  }
 0x22a   :  { %v1413_v47 = vld [vmem:[#allocation10 + $0x30] sm:$0xff]   ;;  %v1417_v51 = vld [vmem:[#allocation10 + $0x38] sm:$0xff]  }
 0x22b   :  { %v308_v53 = vmax.f32 %v304_v50, 0.0  ;;  %v1416_v50 = vld [vmem:[#allocation10 + $0xf8] sm:$0xff]  }
 0x22d   :  { %v309_v55 = vpack.c.bf16 %v308_v53, %v307_v52  ;;  %v1418_v52 = vld [vmem:[#allocation10 + $0xb8] sm:$0xff]   ;;  %v459_v53 = vlaneseq }
 0x22f   :  { %1303 = vmatmul.mubr.bf16.vlgmr.msra.gmra.mrb[4].mxu0 %v309_v55 }
 0x230   :  { %683 = vmatpush1.bf16.msra.mxu0 %v1342_v54  ;;  %714 = vmatprep.mubr.bf16.mxu0 %v1581_v10  ;;  %v460_v54 = vshrl.u32 %v459_v53, 7 }
 0x231   :  { %684 = vmatprep.subr.bf16.mxu0 %v1350_v56 }
 0x232   :  { %v461_v55 = vsub.s32 0, %v460_v54  ;;  %v469_v56 = vsub.s32 2, %v460_v54 }
 0x234   :  { %685 = vmatpush1.bf16.msra.mxu0 %v1348_v57  ;;  %v457_v57 = vld [vmem:[%s1779_s8] sm:$0xf] }
 0x235   :  { %686 = vmatprep.subr.bf16.mxu0 %v1356_v58  ;;  %v465_v58 = vsub.s32 1, %v460_v54 }
 0x238   :  { %687 = vmatpush1.bf16.msra.mxu0 %v1354_v59  ;;  %v473_v59 = vsub.s32 3, %v460_v54 }
 0x239   :  { %688 = vmatprep.subr.bf16.mxu0 %v1362_v60  ;;  %v462_v60 = vrot.slane %v457_v57, %v461_v55 }
 0x23c   :  { %689 = vmatpush1.bf16.msra.mxu0 %v1360_v61  ;;  %v470_v61 = vrot.slane %v457_v57, %v469_v56 }
 0x23d   :  { %690 = vmatprep.subr.bf16.mxu0 %v1368_v62  ;;  %v466_v62 = vrot.slane %v457_v57, %v465_v58 }
 0x240   :  { %691 = vmatpush1.bf16.msra.mxu0 %v1366_v63  ;;  %v474_v63 = vrot.slane %v457_v57, %v473_v59 }
 0x241   :  { %692 = vmatprep.subr.bf16.mxu0 %v1374_v0 }
 0x244   :  { %693 = vmatpush1.bf16.msra.mxu0 %v1372_v1 }
 0x245   :  { %694 = vmatprep.subr.bf16.mxu0 %v1380_v3 }
 0x248   :  { %695 = vmatpush1.bf16.msra.mxu0 %v1378_v5 }
 0x249   :  { %696 = vmatprep.subr.bf16.mxu0 %v1386_v7 }
 0x24c   :  { %697 = vmatpush1.bf16.msra.mxu0 %v1384_v9 }
 0x24d   :  { %1236 = vmatprep.subr.bf16.mxu0 %v1388_v12 }
 0x302   :  { %v415_v14 = vpop.f32.mrb[4].mxu0 }
 0x303   :  { %v416_v15 = vadd.f32 %v1117_v13, %v415_v14  ;;  %v1304_v16 = vpop.f32.mrb[5].mxu0 }
 0x304   :  { %v418_v17 = vpop.f32.mrb[6].mxu0 }
 0x305   :  { %v419_v18 = vadd.f32 %v1117_v13, %v418_v17  ;;  %v1305_v19 = vpop.f32.mrb[7].mxu0  ;;  %v422_v20 = vmax.f32 %v416_v15, 0.0 }
 0x307   :  { %v423_v21 = vmax.f32 %v419_v18, 0.0 }
 0x309   :  { %v424_v24 = vpack.c.bf16 %v423_v21, %v422_v20 }
 0x30b   :  { %672 = vmatmul.mubr.bf16.vlgmr.msra.gmra.mrb[4].mxu1 %v424_v24  ;;  %715 = vmatmul.mubr.bf16.vlgmr.msra.gmra.mrb[8].mxu0 %v424_v24 }
 0x30c   :  { %1215 = vmatpush3.bf16.msra.mxu1 %v1389_v22  ;;  %1237 = vmatpush3.bf16.msra.mxu0 %v1390_v23 }
 0x30d   :  { %1216 = vmatprep.subr.bf16.mxu1 %v1391_v25  ;;  %1238 = vmatprep.subr.bf16.mxu0 %v1392_v26 }
 0x310   :  { %1217 = vmatpush3.bf16.msra.mxu1 %v1393_v27  ;;  %1239 = vmatpush3.bf16.msra.mxu0 %v1394_v28 }
 0x311   :  { %1218 = vmatprep.subr.bf16.mxu1 %v1395_v29  ;;  %1240 = vmatprep.subr.bf16.mxu0 %v1396_v30  ;;  %v1158_v30 = vld [vmem:[%s1781_s10] ss:$0 sm:$0xff] }
 0x314   :  { %1219 = vmatpush3.bf16.msra.mxu1 %v1397_v31  ;;  %1241 = vmatpush3.bf16.msra.mxu0 %v1398_v32 }
 0x315   :  { %1220 = vmatprep.subr.bf16.mxu1 %v1399_v33  ;;  %1242 = vmatprep.subr.bf16.mxu0 %v1400_v34 }
 0x318   :  { %1221 = vmatpush3.bf16.msra.mxu1 %v1401_v35  ;;  %1243 = vmatpush3.bf16.msra.mxu0 %v1402_v36 }
 0x319   :  { %1222 = vmatprep.subr.bf16.mxu1 %v1403_v37  ;;  %1244 = vmatprep.subr.bf16.mxu0 %v1404_v38 }
 0x31c   :  { %1223 = vmatpush3.bf16.msra.mxu1 %v1405_v39  ;;  %1245 = vmatpush3.bf16.msra.mxu0 %v1406_v40 }
 0x31d   :  { %1224 = vmatprep.subr.bf16.mxu1 %v1407_v41  ;;  %1246 = vmatprep.subr.bf16.mxu0 %v1408_v42 }
 0x320   :  { %1225 = vmatpush3.bf16.msra.mxu1 %v1409_v43  ;;  %1247 = vmatpush3.bf16.msra.mxu0 %v1410_v44 }
 0x321   :  { %1226 = vmatprep.subr.bf16.mxu1 %v1411_v45  ;;  %1248 = vmatprep.subr.bf16.mxu0 %v1412_v46 }
 0x324   :  { %1227 = vmatpush3.bf16.msra.mxu1 %v1413_v47  ;;  %1249 = vmatpush3.bf16.msra.mxu0 %v1414_v48 }
 0x325   :  { %1228 = vmatprep.subr.bf16.mxu1 %v1415_v49  ;;  %1250 = vmatprep.subr.bf16.mxu0 %v1416_v50 }
 0x328   :  { %1229 = vmatpush3.bf16.msra.mxu1 %v1417_v51  ;;  %1251 = vmatpush3.bf16.msra.mxu0 %v1418_v52 }
 0x3de   :  { %v673_v0 = vpop.f32.mrb[4].mxu1  ;;  %v716_v1 = vpop.f32.mrb[8].mxu0 }
 0x3df   :  { %v674_v2 = vadd.f32 %v673_v0, %v462_v60  ;;  %v717_v3 = vadd.f32 %v716_v1, %v470_v61  ;;  %v675_v4 = vpop.f32.mrb[5].mxu1  ;;  %v718_v5 = vpop.f32.mrb[9].mxu0 }
 0x3e0   :  { %v676_v6 = vadd.f32 %v675_v4, %v466_v62  ;;  %v719_v7 = vadd.f32 %v718_v5, %v474_v63  ;;  %v677_v8 = vpop.f32.mrb[6].mxu1  ;;  %v720_v9 = vpop.f32.mrb[10].mxu0 }
 0x3e1   :  { %v678_v10 = vadd.f32 %v677_v8, %v462_v60  ;;  %v721_v11 = vadd.f32 %v720_v9, %v470_v61  ;;  %v679_v12 = vpop.f32.mrb[7].mxu1  ;;  %v722_v13 = vpop.f32.mrb[11].mxu0  ;;  %v725_v16 = vmax.f32 %v674_v2, 0.0  ;;  %v727_v17 = vmax.f32 %v717_v3, 0.0 }
 0x3e2   :  { %v680_v14 = vadd.f32 %v679_v12, %v466_v62  ;;  %v723_v15 = vadd.f32 %v722_v13, %v474_v63  ;;  %v726_v20 = vmax.f32 %v676_v6, 0.0  ;;  %v728_v21 = vmax.f32 %v719_v7, 0.0 }
 0x3e3   :  { %v729_v18 = vmax.f32 %v678_v10, 0.0  ;;  %v731_v19 = vmax.f32 %v721_v11, 0.0 }
 0x3e4   :  { %v730_v22 = vmax.f32 %v680_v14, 0.0  ;;  %v732_v23 = vmax.f32 %v723_v15, 0.0 }
 0x3e5   :  { %v733_v24 = vpack.c.bf16 %v729_v18, %v725_v16  ;;  %v735_v25 = vpack.c.bf16 %v731_v19, %v727_v17 }
 0x3e6   :  { %v734_v26 = vpack.c.bf16 %v730_v22, %v726_v20  ;;  %v736_v27 = vpack.c.bf16 %v732_v23, %v728_v21 }
 0x3e8   :  { %1032 = vmatprep.mubr.bf16.mxu1 %v734_v26  ;;  %1073 = vmatprep.mubr.bf16.mxu0 %v736_v27 }
 0x3e9   :  { %1033 = vmatmul.mubr.bf16.vlgmr.msra.gmra.mrb[8].mxu1 %v733_v24  ;;  %1074 = vmatmul.mubr.bf16.vlgmr.msra.gmra.mrb[12].mxu0 %v735_v25 }
 0x4bc   :  { %v1230_v28 = vpop.f32.mrb[8].mxu1  ;;  %v1252_v29 = vpop.f32.mrb[12].mxu0 }
 0x4bd   :  { %v1231_v31 = vpop.f32.mrb[9].mxu1  ;;  %v1253_v32 = vpop.f32.mrb[13].mxu0 }
 0x4be   :  { %v1232_v33 = vadd.f32 %v1231_v31, %v1230_v28  ;;  %v1254_v34 = vadd.f32 %v1253_v32, %v1252_v29  ;;  %v1233_v35 = vpop.f32.mrb[10].mxu1  ;;  %v1255_v36 = vpop.f32.mrb[14].mxu0 }
 0x4bf   :  { %v1234_v37 = vpop.f32.mrb[11].mxu1  ;;  %v1256_v38 = vpop.f32.mrb[15].mxu0 }
 0x4c0   :  { %v1035_v39 = vadd.f32 %v1232_v33, %v1158_v30  ;;  %v1235_v40 = vadd.f32 %v1234_v37, %v1233_v35  ;;  %v1257_v41 = vadd.f32 %v1256_v38, %v1255_v36 }
 0x4c2   :  { %v1076_v42 = vadd.f32 %v1254_v34, %v1035_v39  ;;  %v1038_v43 = vadd.f32 %v1235_v40, %v1158_v30 }
 0x4c4   :  { %v1191_v44 = vmul.f32 -1.442695, %v1076_v42  ;;  %v1079_v45 = vadd.f32 %v1257_v41, %v1038_v43 }
 0x4c6   :  { %1419 = vpow2.f32 %v1191_v44  ;;  %v1192_v46 = vmul.f32 -1.442695, %v1079_v45 }
 0x4c8   :  { %1421 = vpow2.f32 %v1192_v46 }
 0x4d0   :  { %v1420_v47 = vpop.eup %1419 }
 0x4d1   :  { %v1088_v48 = vadd.f32 1.0, %v1420_v47 }
 0x4d2   :  { %v1422_v49 = vpop.eup %1421 }
 0x4d3   :  { %1423 = vrcp.f32 %v1088_v48  ;;  %v1089_v50 = vadd.f32 1.0, %v1422_v49 }
 0x4d5   :  { %1425 = vrcp.f32 %v1089_v50 }
 0x4dd   :  { %v1424_v51 = vpop.eup %1423 }
 0x4de   :  { %1094 = vst [vmem:[%s1782_s11] sm:$0xff] %v1424_v51 }
 0x4df   :  { %v1426_v52 = vpop.eup %1425 }
 0x4e0   :  { %1095 = vst [vmem:[%s1782_s11 + $0x8] sm:$0xff] %v1426_v52 }
 0x4e1   :  { %1100 = vsyncpa [#allocation3], 1 }
 0x4e2   :  { %1101 = vsyncpa [#allocation5], 1 }
 0x4e3   :  { %1102 = vsyncpa [#allocation8], 1 }
 0x4e4   :  { %1103 = vsyncpa [#allocation11], 1 }

</bundles_post_ra>
